<compile_context>
chip_gen: v7x
topology: tpu7x:2x2x1
jax: 0.10.0
libtpu: 0.0.40
codegen_flags: <defaults>
</compile_context>

<pallas_src>
import jax
import jax.numpy as jnp
from jax import lax
from jax.experimental import pallas as pl
from jax.experimental.pallas import tpu as pltpu

_LANES = 128
_SUBLANES = 8
_STRIP = 512          # rows per inner reduction strip (512*128*4 B = 256 KiB f32)


def _round_up(x, m):
    return ((x + m - 1) // m) * m


def _choose_tiles(rows, tile_rows):
    """Pick (tile_rows, strip_rows): aligned, VMEM-friendly, megacore-friendly."""
    if rows <= _STRIP:
        # Single small block; multiple of 16 keeps bf16 sublane packing legal.
        t = max(16, _round_up(rows, 16))
        return t, t
    t = _round_up(min(tile_rows, rows), _STRIP)
    # Encourage >= ~8 grid steps for large inputs (so a v7x megacore can shard
    # the parallel grid axis across its two TensorCores and the pipeline has
    # work to overlap), but never drop below 1024 rows (0.5 MiB/input/step) so
    # the fixed per-grid-step overhead stays small on every generation.
    target = _round_up(pl.cdiv(rows, 8), _STRIP)
    t = min(t, max(2 * _STRIP, target))
    return t, _STRIP


def _make_kernel(tile_rows, strip_rows, total_rows):
    """Build the per-block kernel; all arguments are static at trace time."""
    n_strips = tile_rows // strip_rows
    needs_mask = (total_rows % tile_rows) != 0

    def kernel(mu_ref, lv_ref, out_ref):
        if needs_mask:
            base_row = pl.program_id(0) * tile_rows
            # Hoisted out of the strip loop (broadcasts are not CSE'd).
            row_iota = lax.broadcasted_iota(
                jnp.int32, (strip_rows, _LANES), 0)

        def strip_body(s, acc):
            r0 = pl.multiple_of(s * strip_rows, strip_rows)
            mu = mu_ref[pl.ds(r0, strip_rows), :].astype(jnp.float32)
            lv = lv_ref[pl.ds(r0, strip_rows), :].astype(jnp.float32)
            # Per-element KL term; exp() runs on the EUP (its own bundle
            # slot), everything else is VPU adds/muls -> HBM-bandwidth bound.
            term = 1.0 + lv - mu * mu - jnp.exp(lv)
            if needs_mask:
                # Rows past the end of the (rows, 128) array are whatever the
                # clamped DMA left in VMEM (unspecified) -> force them to 0.
                # Only the last grid block actually has invalid rows; the
                # extra compare+select is negligible VPU work.
                valid = (base_row + r0 + row_iota) < total_rows
                term = jnp.where(valid, term, 0.0)
            # Fold the strip onto one vreg-shaped (8, 128) partial: the
            # reshape matches the native (8, 128) tiling (no relayout) and the
            # axis-0 sum is pure elementwise VPU adds.
            part = term.reshape(strip_rows // _SUBLANES, _SUBLANES, _LANES)
            return acc + part.sum(axis=0)

        acc = lax.fori_loop(
            0, n_strips, strip_body,
            jnp.zeros((_SUBLANES, _LANES), jnp.float32),
            unroll=True,
        )
        out_ref[0] = acc

    return kernel


def kl_divergence_loss(mu, logvar, *, tile_rows=4096):
    """-0.5 * sum(1 + logvar - mu**2 - exp(logvar)) via a Pallas TPU kernel."""
    assert mu.shape == logvar.shape
    n_real = mu.size
    if n_real == 0:
        return jnp.float32(0.0)

    def _as_float_flat(x):
        x = jnp.ravel(x)
        if not jnp.issubdtype(x.dtype, jnp.floating):
            x = x.astype(jnp.float32)
        return x

    mu_f = _as_float_flat(mu)
    lv_f = _as_float_flat(logvar)

    rows = pl.cdiv(n_real, _LANES)
    tile_rows, strip_rows = _choose_tiles(rows, tile_rows)
    num_blocks = pl.cdiv(rows, tile_rows)

    # Single-block inputs: make the array exactly one tile tall (tiny pad) so
    # the block never exceeds the array.  Multi-block inputs: never pad rows --
    # the last (partially out-of-bounds) block is masked in-kernel instead.
    rows_arr = tile_rows if num_blocks == 1 else rows
    n_store = rows_arr * _LANES

    def _to_2d(x):
        if n_store != n_real:
            # Slow path: lane-unaligned tail and/or tiny single-block input.
            # A zero element contributes 1 + 0 - 0 - exp(0) = 0, so no
            # correction term is needed.
            # TODO(synk): a truly zero-copy unaligned tail would need a manual
            # DMA (memory_space=pl.ANY) gather; not worth it for < 1 tile.
            x = jnp.pad(x, (0, n_store - n_real))
        # Fast path (large, 128-aligned inputs): pure reshape, zero-copy.
        return x.reshape(rows_arr, _LANES)

    mu2d = _to_2d(mu_f)
    lv2d = _to_2d(lv_f)

    n_proc = num_blocks * tile_rows * _LANES
    cost = pl.CostEstimate(
        flops=5 * n_proc,
        transcendentals=n_proc,
        bytes_accessed=(mu2d.dtype.itemsize + lv2d.dtype.itemsize) * n_store
        + num_blocks * _SUBLANES * _LANES * 4,
    )

    partials = pl.pallas_call(
        _make_kernel(tile_rows, strip_rows, rows_arr),
        out_shape=jax.ShapeDtypeStruct(
            (num_blocks, _SUBLANES, _LANES), jnp.float32),
        grid_spec=pl.GridSpec(
            grid=(num_blocks,),
            in_specs=[
                pl.BlockSpec((tile_rows, _LANES), lambda i: (i, 0)),
                pl.BlockSpec((tile_rows, _LANES), lambda i: (i, 0)),
            ],
            # One independent vreg-shaped partial per grid block (no revisited
            # accumulator) -> the grid axis is truly parallel.
            out_specs=pl.BlockSpec((1, _SUBLANES, _LANES),
                                   lambda i: (i, 0, 0)),
        ),
        compiler_params=pltpu.CompilerParams(
            # "parallel" lets a v7x megacore shard the grid across its two
            # TensorCores (pltpu.CORE_PARALLEL is worth sweeping on v7x).
            dimension_semantics=("parallel",),
            # 2 inputs x 2 buffers x (tile_rows*128*4B) + strip temporaries
            # ~= 10 MiB at the 4096-row default; 48 MiB leaves headroom for
            # tile_rows=8192 on v7x while staying under its 64 MiB VMEM.
            vmem_limit_bytes=48 * 1024 * 1024,
        ),
        cost_estimate=cost,
    )(mu2d, lv2d)

    # Single tiny cross-lane/cross-sublane reduction + the -0.5 scale.
    return -0.5 * jnp.sum(partials)


if __name__ == "__main__":
    key = jax.random.PRNGKey(0)
    k_mu, k_lv = jax.random.split(key)

    B, D = 16, 32  # small VAE-style latents: 16 samples, 32-dim latent
    mu = jax.random.normal(k_mu, (B, D), dtype=jnp.float32)
    logvar = 0.1 * jax.random.normal(k_lv, (B, D), dtype=jnp.float32)

    loss = jax.block_until_ready(kl_divergence_loss(mu, logvar))

    # pure-JAX reference (same semantics as the PyTorch forward)
    ref = -0.5 * jnp.sum(1.0 + logvar - mu**2 - jnp.exp(logvar))
    assert jnp.allclose(loss, ref, rtol=1e-5, atol=1e-5), (loss, ref)

    print("KERNEL_OK")
</pallas_src>

<mosaic_0001>
module attributes {stable_mosaic.version = 11 : i64} {
  func.func @kernel(%arg0: i32, %arg1: memref<16x128xf32, #tpu.memory_space<vmem>>, %arg2: memref<16x128xf32, #tpu.memory_space<vmem>>, %arg3: memref<1x8x128xf32, #tpu.memory_space<vmem>>) attributes {dimension_semantics = [#tpu.dimension_semantics<parallel>], iteration_bounds = array<i64: 1>, scalar_prefetch = 0 : i64, scratch_operands = 0 : i64, tpu.core_type = #tpu.core_type<tc>, window_params = [{transform_indices = @transform_0, window_bounds = array<i64: 16, 128>}, {transform_indices = @transform_1, window_bounds = array<i64: 16, 128>}, {transform_indices = @transform_2, window_bounds = array<i64: 1, 8, 128>}]} {
    %cst = arith.constant 0.000000e+00 : f32
    %0 = vector.broadcast %cst : f32 to vector<8x128xf32>
    %c0_i32 = arith.constant 0 : i32
    %c16_i32 = arith.constant 16 : i32
    %1 = arith.muli %c0_i32, %c16_i32 : i32
    %2 = tpu.assume_multiple %1, 16 : i32
    %3 = arith.index_cast %2 : i32 to index
    %c0 = arith.constant 0 : index
    %4 = vector.load %arg1[%3, %c0] : memref<16x128xf32, #tpu.memory_space<vmem>>, vector<16x128xf32>
    %5 = arith.index_cast %2 : i32 to index
    %c0_0 = arith.constant 0 : index
    %6 = vector.load %arg2[%5, %c0_0] : memref<16x128xf32, #tpu.memory_space<vmem>>, vector<16x128xf32>
    %cst_1 = arith.constant 1.000000e+00 : f32
    %7 = vector.broadcast %cst_1 : f32 to vector<16x128xf32>
    %8 = arith.addf %7, %6 : vector<16x128xf32>
    %9 = arith.mulf %4, %4 : vector<16x128xf32>
    %10 = arith.subf %8, %9 : vector<16x128xf32>
    %11 = math.exp %6 : vector<16x128xf32>
    %12 = arith.subf %10, %11 : vector<16x128xf32>
    %13 = vector.shape_cast %12 : vector<16x128xf32> to vector<2x8x128xf32>
    %cst_2 = arith.constant dense<0.000000e+00> : vector<8x128xf32>
    %14 = vector.multi_reduction <add>, %13, %cst_2 [0] : vector<2x8x128xf32> to vector<8x128xf32>
    %15 = arith.addf %0, %14 : vector<8x128xf32>
    %c1_i32 = arith.constant 1 : i32
    %c0_3 = arith.constant 0 : index
    %c0_4 = arith.constant 0 : index
    %c0_5 = arith.constant 0 : index
    %16 = vector.load %arg3[%c0_3, %c0_4, %c0_5] : memref<1x8x128xf32, #tpu.memory_space<vmem>>, vector<1x8x128xf32>
    %17 = vector.shape_cast %16 : vector<1x8x128xf32> to vector<8x128xf32>
    %18 = vector.shape_cast %15 : vector<8x128xf32> to vector<1x8x128xf32>
    tpu.vector_store %arg3[%c0_3, %c0_4, %c0_5], %18 {strides = array<i32>} : memref<1x8x128xf32, #tpu.memory_space<vmem>>, vector<1x8x128xf32>,
    return
  }
  func.func @transform_0(%arg0: i32) -> (i32, i32) {
    %c0_i32 = arith.constant 0 : i32
    %c0_i32_0 = arith.constant 0 : i32
    return %arg0, %c0_i32 : i32, i32
  }
  func.func @transform_1(%arg0: i32) -> (i32, i32) {
    %c0_i32 = arith.constant 0 : i32
    %c0_i32_0 = arith.constant 0 : i32
    return %arg0, %c0_i32 : i32, i32
  }
  func.func @transform_2(%arg0: i32) -> (i32, i32, i32) {
    %c0_i32 = arith.constant 0 : i32
    %c0_i32_0 = arith.constant 0 : i32
    %c0_i32_1 = arith.constant 0 : i32
    return %arg0, %c0_i32, %c0_i32_0 : i32, i32, i32
  }
}

</mosaic_0001>

<bundles_post_ra>
// kernel: tpu_custom_call.1
= control target key start
LH: loop header
LB: loop body
LE: loop exit
PB: predicated region body
PF: predicated region fallthrough
CT: control target
= control target key end

     0   :  { %7 = vsyncpa [#allocation3], 0  ;;  %s212_s0 = inlined_call_operand.hbm [shape: f32[16,128], index: 0, kind: input, shape index: {}]   ;;  %s213_s1 = inlined_call_operand.hbm [shape: f32[16,128], index: 1, kind: input, shape index: {}]   ;;  %s214_s2 = inlined_call_operand.hbm [shape: f32[1,8,128], index: 2, kind: output, shape index: {}]  }
   0x1   :  { %8 = vsyncpa [#allocation6], 0 }
   0x2   :  { %9 = vsyncpa [#allocation4], 0  ;;  %s156_s9 = smov [#allocation2]   ;;  %s84_s13 = scalar_lea.hbm %s212_s0, 256 }
   0x3   :  { %s15_s10 = sshll.u32 %s156_s9, 4  ;;  %p85_p0 = scmp.ne.s32.totalorder %s212_s0, %s84_s13  ;;  %s16_s10 = int_to_ptr.vmem [resolvable:$true] %s15_s10 }
   0x4   :  { %p88_p1 = scmp.lt.u32.totalorder %s84_s13, %s212_s0 }
   0x6   :  { %p90_p2 = pnand %p88_p1, %p85_p0 }
   0x8   :  { %93 = shalt.err (!%p90_p2)
}
   0x9   :  { %s94_s18 = scalar_lea.vmem %s16_s10, 256  ;;  %p99_p4 = scmp.lt.s32.totalorder %s16_s10, %s16_s10 }
   0xa   :  { %p95_p3 = scmp.ne.s32.totalorder %s16_s10, %s94_s18  ;;  %p100_p5 = scmp.lt.s32.totalorder %s94_s18, %s94_s18 }
   0xc   :  { %p101_p6 = por %p100_p5, %p99_p4 }
   0xe   :  { %p102_p7 = pnand %p101_p6, %p95_p3 }
  0x10   :  { %105 = shalt.err (!%p102_p7)
}
  0x11   :  { %s157_s19 = smov 128   ;;  %s158_s20 = smov 8  }
  0x12   :  { %21 = dma.hbm_to_vmem [thread:$0]  %s212_s0, 256, %s16_s10, [#allocation3], %s157_s19, %s157_s19, %s158_s20  }
  0x13   :  { %s159_s23 = smov [#allocation5]   ;;  %s106_s27 = scalar_lea.hbm %s213_s1, 256 }
  0x14   :  { %s27_s24 = sshll.u32 %s159_s23, 4  ;;  %p107_p8 = scmp.ne.s32.totalorder %s213_s1, %s106_s27  ;;  %s28_s24 = int_to_ptr.vmem [resolvable:$true] %s27_s24 }
  0x15   :  { %p110_p9 = scmp.lt.u32.totalorder %s106_s27, %s213_s1 }
  0x17   :  { %p112_p10 = pnand %p110_p9, %p107_p8 }
  0x19   :  { %115 = shalt.err (!%p112_p10)
}
  0x1a   :  { %s116_s4 = scalar_lea.vmem %s28_s24, 256  ;;  %p121_p12 = scmp.lt.s32.totalorder %s28_s24, %s28_s24 }
  0x1b   :  { %p117_p11 = scmp.ne.s32.totalorder %s28_s24, %s116_s4  ;;  %p122_p13 = scmp.lt.s32.totalorder %s116_s4, %s116_s4 }
  0x1d   :  { %p123_p0 = por %p122_p13, %p121_p12 }
  0x1f   :  { %p124_p1 = pnand %p123_p0, %p117_p11 }
  0x21   :  { %127 = shalt.err (!%p124_p1)
}
  0x22   :  { %33 = dma.hbm_to_vmem [thread:$0]  %s213_s1, 256, %s28_s24, [#allocation6], %s157_s19, %s157_s19, %s158_s20  }
  0x23   :  { %150 = dma.done.wait [#allocation3], 256  }
  0x24   :  { %151 = vsyncadd [#allocation3], 4294967040 }
  0x25   :  { %152 = dma.done.wait [#allocation6], 256  }
  0x26   :  { %153 = vsyncadd [#allocation6], 4294967040  ;;  %v42_v0 = vld [vmem:[#allocation5] sm:$0xff]  ;;  %v43_v1 = vld [vmem:[#allocation5 + $0x8] sm:$0xff]  ;;  %s160_s1 = smov [#allocation7]  }
  0x27   :  { %v50_v2 = vmul.f32 1.442695, %v42_v0  ;;  %v52_v3 = vmul.f32 1.442695, %v43_v1  ;;  %v40_v4 = vld [vmem:[#allocation2] sm:$0xff]  ;;  %v41_v5 = vld [vmem:[#allocation2 + $0x8] sm:$0xff] }
  0x28   :  { %v44_v6 = vadd.f32 1.0, %v42_v0  ;;  %v46_v7 = vmul.f32 %v40_v4, %v40_v4  ;;  %v45_v8 = vadd.f32 1.0, %v43_v1  ;;  %v47_v9 = vmul.f32 %v41_v5, %v41_v5  ;;  %s65_s6 = sshll.u32 %s160_s1, 4  ;;  %s66_s6 = int_to_ptr.vmem [resolvable:$true] %s65_s6 }
  0x29   :  { %80 = vpow2.f32 %v50_v2  ;;  %s128_s7 = scalar_lea.vmem %s66_s6, 128  ;;  %p133_p3 = scmp.lt.s32.totalorder %s66_s6, %s66_s6 }
  0x2a   :  { %82 = vpow2.f32 %v52_v3  ;;  %v48_v10 = vsub.f32 %v44_v6, %v46_v7  ;;  %v49_v11 = vsub.f32 %v45_v8, %v47_v9  ;;  %p129_p2 = scmp.ne.s32.totalorder %s66_s6, %s128_s7  ;;  %p134_p4 = scmp.lt.s32.totalorder %s128_s7, %s128_s7 }
  0x2c   :  { %p135_p5 = por %p134_p4, %p133_p3 }
  0x2e   :  { %p136_p6 = pnand %p135_p5, %p129_p2 }
  0x33   :  { %v81_v12 = vpop.eup %80 }
  0x34   :  { %v83_v13 = vpop.eup %82  ;;  %v54_v14 = vsub.f32 %v48_v10, %v81_v12 }
  0x35   :  { %v55_v15 = vsub.f32 %v49_v11, %v83_v13 }
  0x37   :  { %v56_v16 = vadd.f32 %v55_v15, %v54_v14 }
  0x39   :  { %58 = vst [vmem:[#allocation7] sm:$0xff] %v56_v16 }
  0x3a   :  { %139 = shalt.err (!%p136_p6)
}
  0x3b   :  { %s140_s10 = scalar_lea.hbm %s214_s2, 128 }
  0x3c   :  { %p141_p7 = scmp.ne.s32.totalorder %s214_s2, %s140_s10  ;;  %p144_p8 = scmp.lt.u32.totalorder %s140_s10, %s214_s2 }
  0x3e   :  { %p146_p9 = pnand %p144_p8, %p141_p7 }
  0x40   :  { %149 = shalt.err (!%p146_p9)
}
  0x41   :  { %68 = dma.vmem_to_hbm [thread:$0]  %s66_s6, 128, %s214_s2, [#allocation4]  }
  0x42   :  { %154 = dma.done.wait [#allocation4], 128  }
  0x43   :  { %155 = vsyncadd [#allocation4], 4294967168 }
  0x44   :  { %72 = vsyncpa [#allocation3], 1 }
  0x45   :  { %73 = vsyncpa [#allocation6], 1 }
  0x46   :  { %74 = vsyncpa [#allocation4], 1 }

</bundles_post_ra>
